<compile_context>
chip_gen: v7x
topology: tpu7x:2x2x1
jax: 0.10.0
libtpu: 0.0.40
codegen_flags: <defaults>
</compile_context>

<pallas_src>
import functools
import math

import jax
import jax.numpy as jnp
from jax.experimental import pallas as pl
from jax.experimental.pallas import tpu as pltpu


def _attention_classifier_kernel(
    x_ref,        # (B*S, E)   flattened activations
    wqkv_ref,     # (E, 3E)    fused Q|K|V weight
    bqkv_ref,     # (1, 3E)    fused Q|K|V bias
    wfh_ref,      # (H, Dh, E) output-projection weight, split by head rows
    bf_ref,       # (1, E)
    w1_ref,       # (E, Hd)
    b1_ref,       # (1, Hd)
    w2_ref,       # (Hd, Cpad) classifier weight, classes padded to lane width
    b2_ref,       # (1, Cpad)
    out_ref,      # (B, Cpad)
    *,
    batch: int,
    seq: int,
    embed: int,
    num_heads: int,
    head_dim: int,
):
    x2 = x_ref[...]                                               # (B*S, E) f32

    # ---- fused QKV projection: one MXU matmul with N = 3E ----
    qkv = (
        jnp.dot(x2, wqkv_ref[...], preferred_element_type=jnp.float32)
        + bqkv_ref[...]
    )                                                             # (B*S, 3E)

    scale = 1.0 / math.sqrt(float(head_dim))

    # ---- per-head scaled-dot-product attention, batched over the batch axis.
    # Each head's output is folded straight into the output projection
    # (y += attn_h @ wf_rows_h), so no lane-concat of 8-wide head pieces.
    y2 = jnp.zeros((batch * seq, embed), jnp.float32)
    for h in range(num_heads):
        q_lo = h * head_dim
        k_lo = embed + h * head_dim
        v_lo = 2 * embed + h * head_dim

        qh = qkv[:, q_lo:q_lo + head_dim].reshape(batch, seq, head_dim)
        kh = qkv[:, k_lo:k_lo + head_dim].reshape(batch, seq, head_dim)
        vh = qkv[:, v_lo:v_lo + head_dim].reshape(batch, seq, head_dim)

        # contraction over the last dim of both operands: no kh transpose.
        scores = jnp.einsum(
            "bsd,btd->bst", qh, kh, preferred_element_type=jnp.float32
        ) * scale                                                 # (B, S, S)
        m = jnp.max(scores, axis=-1, keepdims=True)
        p = jnp.exp(scores - m)
        p = p * pl.reciprocal(jnp.sum(p, axis=-1, keepdims=True), approx=True)

        oh = jnp.einsum(
            "bst,btd->bsd", p, vh, preferred_element_type=jnp.float32
        )                                                         # (B, S, Dh)

        y2 = y2 + jnp.dot(
            oh.reshape(batch * seq, head_dim),
            wfh_ref[h],                                           # (Dh, E)
            preferred_element_type=jnp.float32,
        )

    # ---- output projection bias + residual ----
    y2 = y2 + bf_ref[...] + x2                                    # (B*S, E)

    # ---- mean pool over the sequence ----
    pooled = jnp.mean(y2.reshape(batch, seq, embed), axis=1)      # (B, E)

    # ---- classifier head: fc1 -> relu -> fc2 (lane-padded classes) ----
    h1 = jnp.dot(pooled, w1_ref[...], preferred_element_type=jnp.float32) + b1_ref[...]
    h1 = jnp.maximum(h1, 0.0)
    logits = jnp.dot(h1, w2_ref[...], preferred_element_type=jnp.float32) + b2_ref[...]

    out_ref[...] = logits.astype(out_ref.dtype)


def multihead_attention_classifier(x, params, *, num_heads: int):
    """x: (B, S, E) float32.  params: dict of weights (in, out) / biases (1, out)."""
    B, S, E = x.shape
    Dh = E // num_heads
    Hd = params["w1"].shape[1]
    C = params["w2"].shape[1]
    C_pad = ((C + 127) // 128) * 128   # lane-dense output width

    # ---- wrapper-side layout plumbing (free XLA reshape/concat/pad) ----
    x2 = x.reshape(B * S, E)
    wqkv = jnp.concatenate([params["wq"], params["wk"], params["wv"]], axis=1)  # (E, 3E)
    bqkv = jnp.concatenate([params["bq"], params["bk"], params["bv"]], axis=1)  # (1, 3E)
    wfh = params["wf"].reshape(num_heads, Dh, E)                                # (H, Dh, E)
    w2p = jnp.pad(params["w2"], ((0, 0), (0, C_pad - C)))                       # (Hd, Cpad)
    b2p = jnp.pad(params["b2"], ((0, 0), (0, C_pad - C)))                       # (1, Cpad)

    kernel = functools.partial(
        _attention_classifier_kernel,
        batch=B, seq=S, embed=E, num_heads=num_heads, head_dim=Dh,
    )

    flops = int(
        2 * B * S * E * 3 * E                       # fused QKV projection
        + num_heads * (4 * B * S * S * Dh)          # scores + attn @ v
        + 2 * B * S * E * E                         # output projection
        + 2 * B * E * Hd                            # fc1
        + 2 * B * Hd * C_pad                        # fc2
    )
    operands = (x2, wqkv, bqkv, wfh, params["bf"], params["w1"], params["b1"], w2p, b2p)
    bytes_accessed = int(
        sum(a.size * a.dtype.itemsize for a in operands) + B * C_pad * 4
    )
    cost = pl.CostEstimate(
        flops=flops,
        transcendentals=int(num_heads * B * S * S),
        bytes_accessed=bytes_accessed,
    )

    vmem = pltpu.MemorySpace.VMEM
    out_padded = pl.pallas_call(
        kernel,
        out_shape=jax.ShapeDtypeStruct((B, C_pad), jnp.float32),
        in_specs=[pl.BlockSpec(memory_space=vmem)] * len(operands),
        out_specs=pl.BlockSpec(memory_space=vmem),
        cost_estimate=cost,
    )(*operands)

    return out_padded[:, :C]


def reference_forward(x, params, *, num_heads: int):
    """Pure-JAX reference mirroring the PyTorch module's forward semantics."""
    B, S, E = x.shape
    Dh = E // num_heads

    def lin(z, w, b):
        return z @ w + b[0]

    q = lin(x, params["wq"], params["bq"]).reshape(B, S, num_heads, Dh).transpose(0, 2, 1, 3)
    k = lin(x, params["wk"], params["bk"]).reshape(B, S, num_heads, Dh).transpose(0, 2, 1, 3)
    v = lin(x, params["wv"], params["bv"]).reshape(B, S, num_heads, Dh).transpose(0, 2, 1, 3)

    attn = jnp.einsum("bhqd,bhkd->bhqk", q, k) / jnp.sqrt(jnp.float32(Dh))
    attn = jax.nn.softmax(attn, axis=-1)
    attended = jnp.einsum("bhqk,bhkd->bhqd", attn, v).transpose(0, 2, 1, 3).reshape(B, S, E)

    y = lin(attended, params["wf"], params["bf"]) + x
    pooled = y.mean(axis=1)
    h1 = jax.nn.relu(lin(pooled, params["w1"], params["b1"]))
    return lin(h1, params["w2"], params["b2"])


def init_params(key, embed_dim, hidden_dim, num_classes):
    keys = jax.random.split(key, 12)
    s = 0.05

    def w(k, shape):
        return jax.random.normal(k, shape, jnp.float32) * s

    return {
        "wq": w(keys[0], (embed_dim, embed_dim)), "bq": w(keys[1], (1, embed_dim)),
        "wk": w(keys[2], (embed_dim, embed_dim)), "bk": w(keys[3], (1, embed_dim)),
        "wv": w(keys[4], (embed_dim, embed_dim)), "bv": w(keys[5], (1, embed_dim)),
        "wf": w(keys[6], (embed_dim, embed_dim)), "bf": w(keys[7], (1, embed_dim)),
        "w1": w(keys[8], (embed_dim, hidden_dim)), "b1": w(keys[9], (1, hidden_dim)),
        "w2": w(keys[10], (hidden_dim, num_classes)), "b2": w(keys[11], (1, num_classes)),
    }


if __name__ == "__main__":
    B, S, E = 2, 8, 32
    NUM_HEADS = 4
    HIDDEN = 32
    NUM_CLASSES = 14  # CheXbert-style label count

    key = jax.random.PRNGKey(0)
    kx, kp = jax.random.split(key)
    x = jax.random.normal(kx, (B, S, E), jnp.float32)
    params = init_params(kp, E, HIDDEN, NUM_CLASSES)

    out = multihead_attention_classifier(x, params, num_heads=NUM_HEADS)
    out = jax.block_until_ready(out)

    ref = reference_forward(x, params, num_heads=NUM_HEADS)
    assert out.shape == (B, NUM_CLASSES)
    assert jnp.allclose(out, ref, atol=1e-4, rtol=1e-4), "Pallas output mismatch vs reference"

    print("KERNEL_OK")
</pallas_src>

<mosaic_0001>
module attributes {stable_mosaic.version = 11 : i64} {
  func.func @_attention_classifier_kernel(%arg0: memref<16x32xf32, #tpu.memory_space<vmem>>, %arg1: memref<32x96xf32, #tpu.memory_space<vmem>>, %arg2: memref<1x96xf32, #tpu.memory_space<vmem>>, %arg3: memref<4x8x32xf32, #tpu.memory_space<vmem>>, %arg4: memref<1x32xf32, #tpu.memory_space<vmem>>, %arg5: memref<32x32xf32, #tpu.memory_space<vmem>>, %arg6: memref<1x32xf32, #tpu.memory_space<vmem>>, %arg7: memref<32x128xf32, #tpu.memory_space<vmem>>, %arg8: memref<1x128xf32, #tpu.memory_space<vmem>>, %arg9: memref<2x128xf32, #tpu.memory_space<vmem>>) attributes {dimension_semantics = [], scalar_prefetch = 0 : i64, scratch_operands = 0 : i64, tpu.core_type = #tpu.core_type<tc>} {
    %c0 = arith.constant 0 : index
    %c0_0 = arith.constant 0 : index
    %0 = vector.load %arg0[%c0, %c0_0] : memref<16x32xf32, #tpu.memory_space<vmem>>, vector<16x32xf32>
    %c0_1 = arith.constant 0 : index
    %c0_2 = arith.constant 0 : index
    %1 = vector.load %arg1[%c0_1, %c0_2] : memref<32x96xf32, #tpu.memory_space<vmem>>, vector<32x96xf32>
    %cst = arith.constant dense<0.000000e+00> : vector<16x96xf32>
    %2 = tpu.matmul %0, %1, %cst {dimension_numbers = #tpu.dot_dimension_numbers<[1], [0], [0], [1], [0, 0, 1, 1], [], []>} : vector<16x32xf32>, vector<32x96xf32>, vector<16x96xf32> -> vector<16x96xf32>
    %c0_3 = arith.constant 0 : index
    %c0_4 = arith.constant 0 : index
    %3 = vector.load %arg2[%c0_3, %c0_4] : memref<1x96xf32, #tpu.memory_space<vmem>>, vector<1x96xf32>
    %4 = vector.broadcast %3 : vector<1x96xf32> to vector<16x96xf32>
    %5 = arith.addf %2, %4 : vector<16x96xf32>
    %cst_5 = arith.constant 0.000000e+00 : f32
    %6 = vector.broadcast %cst_5 : f32 to vector<16x32xf32>
    %7 = vector.extract_strided_slice %5 {offsets = [0, 0], sizes = [16, 8], strides = [1, 1]} : vector<16x96xf32> to vector<16x8xf32>
    %8 = vector.shape_cast %7 : vector<16x8xf32> to vector<2x8x8xf32>
    %9 = vector.extract_strided_slice %5 {offsets = [0, 32], sizes = [16, 8], strides = [1, 1]} : vector<16x96xf32> to vector<16x8xf32>
    %10 = vector.shape_cast %9 : vector<16x8xf32> to vector<2x8x8xf32>
    %11 = vector.extract_strided_slice %5 {offsets = [0, 64], sizes = [16, 8], strides = [1, 1]} : vector<16x96xf32> to vector<16x8xf32>
    %12 = vector.shape_cast %11 : vector<16x8xf32> to vector<2x8x8xf32>
    "tpu.trace_start"() <{level = 10 : i32, message = "bsd,btd->bst"}> : () -> ()
    %cst_6 = arith.constant dense<0.000000e+00> : vector<2x8x8xf32>
    %13 = tpu.matmul %8, %10, %cst_6 {dimension_numbers = #tpu.dot_dimension_numbers<[2], [2], [1], [1], [0, 0, 0, 1, 1, 1], [0], [0]>} : vector<2x8x8xf32>, vector<2x8x8xf32>, vector<2x8x8xf32> -> vector<2x8x8xf32>
    "tpu.trace_stop"() : () -> ()
    %cst_7 = arith.constant 0.353553385 : f32
    %14 = vector.broadcast %cst_7 : f32 to vector<2x8x8xf32>
    %15 = arith.mulf %13, %14 : vector<2x8x8xf32>
    %cst_8 = arith.constant dense<0xFF800000> : vector<2x8xf32>
    %16 = vector.multi_reduction <maximumf>, %15, %cst_8 [2] : vector<2x8x8xf32> to vector<2x8xf32>
    %17 = vector.shape_cast %16 : vector<2x8xf32> to vector<2x8x1xf32>
    %18 = vector.broadcast %17 : vector<2x8x1xf32> to vector<2x8x8xf32>
    %19 = arith.subf %15, %18 : vector<2x8x8xf32>
    %20 = math.exp %19 : vector<2x8x8xf32>
    %cst_9 = arith.constant dense<0.000000e+00> : vector<2x8xf32>
    %21 = vector.multi_reduction <add>, %20, %cst_9 [2] : vector<2x8x8xf32> to vector<2x8xf32>
    %22 = vector.shape_cast %21 : vector<2x8xf32> to vector<2x8x1xf32>
    %23 = tpu.reciprocal %22 {approx = true} : vector<2x8x1xf32> -> vector<2x8x1xf32>
    %24 = vector.broadcast %23 : vector<2x8x1xf32> to vector<2x8x8xf32>
    %25 = arith.mulf %20, %24 : vector<2x8x8xf32>
    "tpu.trace_start"() <{level = 10 : i32, message = "bst,btd->bsd"}> : () -> ()
    %cst_10 = arith.constant dense<0.000000e+00> : vector<2x8x8xf32>
    %26 = tpu.matmul %25, %12, %cst_10 {dimension_numbers = #tpu.dot_dimension_numbers<[2], [1], [1], [2], [0, 0, 0, 1, 1, 2], [0], [0]>} : vector<2x8x8xf32>, vector<2x8x8xf32>, vector<2x8x8xf32> -> vector<2x8x8xf32>
    "tpu.trace_stop"() : () -> ()
    %27 = vector.shape_cast %26 : vector<2x8x8xf32> to vector<16x8xf32>
    %c0_11 = arith.constant 0 : index
    %c0_12 = arith.constant 0 : index
    %c0_13 = arith.constant 0 : index
    %28 = vector.load %arg3[%c0_11, %c0_12, %c0_13] : memref<4x8x32xf32, #tpu.memory_space<vmem>>, vector<1x8x32xf32>
    %29 = vector.shape_cast %28 : vector<1x8x32xf32> to vector<8x32xf32>
    %cst_14 = arith.constant dense<0.000000e+00> : vector<16x32xf32>
    %30 = tpu.matmul %27, %29, %cst_14 {dimension_numbers = #tpu.dot_dimension_numbers<[1], [0], [0], [1], [0, 0, 1, 1], [], []>} : vector<16x8xf32>, vector<8x32xf32>, vector<16x32xf32> -> vector<16x32xf32>
    %31 = arith.addf %6, %30 : vector<16x32xf32>
    %32 = vector.extract_strided_slice %5 {offsets = [0, 8], sizes = [16, 8], strides = [1, 1]} : vector<16x96xf32> to vector<16x8xf32>
    %33 = vector.shape_cast %32 : vector<16x8xf32> to vector<2x8x8xf32>
    %34 = vector.extract_strided_slice %5 {offsets = [0, 40], sizes = [16, 8], strides = [1, 1]} : vector<16x96xf32> to vector<16x8xf32>
    %35 = vector.shape_cast %34 : vector<16x8xf32> to vector<2x8x8xf32>
    %36 = vector.extract_strided_slice %5 {offsets = [0, 72], sizes = [16, 8], strides = [1, 1]} : vector<16x96xf32> to vector<16x8xf32>
    %37 = vector.shape_cast %36 : vector<16x8xf32> to vector<2x8x8xf32>
    "tpu.trace_start"() <{level = 10 : i32, message = "bsd,btd->bst"}> : () -> ()
    %cst_15 = arith.constant dense<0.000000e+00> : vector<2x8x8xf32>
    %38 = tpu.matmul %33, %35, %cst_15 {dimension_numbers = #tpu.dot_dimension_numbers<[2], [2], [1], [1], [0, 0, 0, 1, 1, 1], [0], [0]>} : vector<2x8x8xf32>, vector<2x8x8xf32>, vector<2x8x8xf32> -> vector<2x8x8xf32>
    "tpu.trace_stop"() : () -> ()
    %cst_16 = arith.constant 0.353553385 : f32
    %39 = vector.broadcast %cst_16 : f32 to vector<2x8x8xf32>
    %40 = arith.mulf %38, %39 : vector<2x8x8xf32>
    %cst_17 = arith.constant dense<0xFF800000> : vector<2x8xf32>
    %41 = vector.multi_reduction <maximumf>, %40, %cst_17 [2] : vector<2x8x8xf32> to vector<2x8xf32>
    %42 = vector.shape_cast %41 : vector<2x8xf32> to vector<2x8x1xf32>
    %43 = vector.broadcast %42 : vector<2x8x1xf32> to vector<2x8x8xf32>
    %44 = arith.subf %40, %43 : vector<2x8x8xf32>
    %45 = math.exp %44 : vector<2x8x8xf32>
    %cst_18 = arith.constant dense<0.000000e+00> : vector<2x8xf32>
    %46 = vector.multi_reduction <add>, %45, %cst_18 [2] : vector<2x8x8xf32> to vector<2x8xf32>
    %47 = vector.shape_cast %46 : vector<2x8xf32> to vector<2x8x1xf32>
    %48 = tpu.reciprocal %47 {approx = true} : vector<2x8x1xf32> -> vector<2x8x1xf32>
    %49 = vector.broadcast %48 : vector<2x8x1xf32> to vector<2x8x8xf32>
    %50 = arith.mulf %45, %49 : vector<2x8x8xf32>
    "tpu.trace_start"() <{level = 10 : i32, message = "bst,btd->bsd"}> : () -> ()
    %cst_19 = arith.constant dense<0.000000e+00> : vector<2x8x8xf32>
    %51 = tpu.matmul %50, %37, %cst_19 {dimension_numbers = #tpu.dot_dimension_numbers<[2], [1], [1], [2], [0, 0, 0, 1, 1, 2], [0], [0]>} : vector<2x8x8xf32>, vector<2x8x8xf32>, vector<2x8x8xf32> -> vector<2x8x8xf32>
    "tpu.trace_stop"() : () -> ()
    %52 = vector.shape_cast %51 : vector<2x8x8xf32> to vector<16x8xf32>
    %c1 = arith.constant 1 : index
    %c0_20 = arith.constant 0 : index
    %c0_21 = arith.constant 0 : index
    %53 = vector.load %arg3[%c1, %c0_20, %c0_21] : memref<4x8x32xf32, #tpu.memory_space<vmem>>, vector<1x8x32xf32>
    %54 = vector.shape_cast %53 : vector<1x8x32xf32> to vector<8x32xf32>
    %cst_22 = arith.constant dense<0.000000e+00> : vector<16x32xf32>
    %55 = tpu.matmul %52, %54, %cst_22 {dimension_numbers = #tpu.dot_dimension_numbers<[1], [0], [0], [1], [0, 0, 1, 1], [], []>} : vector<16x8xf32>, vector<8x32xf32>, vector<16x32xf32> -> vector<16x32xf32>
    %56 = arith.addf %31, %55 : vector<16x32xf32>
    %57 = vector.extract_strided_slice %5 {offsets = [0, 16], sizes = [16, 8], strides = [1, 1]} : vector<16x96xf32> to vector<16x8xf32>
    %58 = vector.shape_cast %57 : vector<16x8xf32> to vector<2x8x8xf32>
    %59 = vector.extract_strided_slice %5 {offsets = [0, 48], sizes = [16, 8], strides = [1, 1]} : vector<16x96xf32> to vector<16x8xf32>
    %60 = vector.shape_cast %59 : vector<16x8xf32> to vector<2x8x8xf32>
    %61 = vector.extract_strided_slice %5 {offsets = [0, 80], sizes = [16, 8], strides = [1, 1]} : vector<16x96xf32> to vector<16x8xf32>
    %62 = vector.shape_cast %61 : vector<16x8xf32> to vector<2x8x8xf32>
    "tpu.trace_start"() <{level = 10 : i32, message = "bsd,btd->bst"}> : () -> ()
    %cst_23 = arith.constant dense<0.000000e+00> : vector<2x8x8xf32>
    %63 = tpu.matmul %58, %60, %cst_23 {dimension_numbers = #tpu.dot_dimension_numbers<[2], [2], [1], [1], [0, 0, 0, 1, 1, 1], [0], [0]>} : vector<2x8x8xf32>, vector<2x8x8xf32>, vector<2x8x8xf32> -> vector<2x8x8xf32>
    "tpu.trace_stop"() : () -> ()
    %cst_24 = arith.constant 0.353553385 : f32
    %64 = vector.broadcast %cst_24 : f32 to vector<2x8x8xf32>
    %65 = arith.mulf %63, %64 : vector<2x8x8xf32>
    %cst_25 = arith.constant dense<0xFF800000> : vector<2x8xf32>
    %66 = vector.multi_reduction <maximumf>, %65, %cst_25 [2] : vector<2x8x8xf32> to vector<2x8xf32>
    %67 = vector.shape_cast %66 : vector<2x8xf32> to vector<2x8x1xf32>
    %68 = vector.broadcast %67 : vector<2x8x1xf32> to vector<2x8x8xf32>
    %69 = arith.subf %65, %68 : vector<2x8x8xf32>
    %70 = math.exp %69 : vector<2x8x8xf32>
    %cst_26 = arith.constant dense<0.000000e+00> : vector<2x8xf32>
    %71 = vector.multi_reduction <add>, %70, %cst_26 [2] : vector<2x8x8xf32> to vector<2x8xf32>
    %72 = vector.shape_cast %71 : vector<2x8xf32> to vector<2x8x1xf32>
    %73 = tpu.reciprocal %72 {approx = true} : vector<2x8x1xf32> -> vector<2x8x1xf32>
    %74 = vector.broadcast %73 : vector<2x8x1xf32> to vector<2x8x8xf32>
    %75 = arith.mulf %70, %74 : vector<2x8x8xf32>
    "tpu.trace_start"() <{level = 10 : i32, message = "bst,btd->bsd"}> : () -> ()
    %cst_27 = arith.constant dense<0.000000e+00> : vector<2x8x8xf32>
    %76 = tpu.matmul %75, %62, %cst_27 {dimension_numbers = #tpu.dot_dimension_numbers<[2], [1], [1], [2], [0, 0, 0, 1, 1, 2], [0], [0]>} : vector<2x8x8xf32>, vector<2x8x8xf32>, vector<2x8x8xf32> -> vector<2x8x8xf32>
    "tpu.trace_stop"() : () -> ()
    %77 = vector.shape_cast %76 : vector<2x8x8xf32> to vector<16x8xf32>
    %c2 = arith.constant 2 : index
    %c0_28 = arith.constant 0 : index
    %c0_29 = arith.constant 0 : index
    %78 = vector.load %arg3[%c2, %c0_28, %c0_29] : memref<4x8x32xf32, #tpu.memory_space<vmem>>, vector<1x8x32xf32>
    %79 = vector.shape_cast %78 : vector<1x8x32xf32> to vector<8x32xf32>
    %cst_30 = arith.constant dense<0.000000e+00> : vector<16x32xf32>
    %80 = tpu.matmul %77, %79, %cst_30 {dimension_numbers = #tpu.dot_dimension_numbers<[1], [0], [0], [1], [0, 0, 1, 1], [], []>} : vector<16x8xf32>, vector<8x32xf32>, vector<16x32xf32> -> vector<16x32xf32>
    %81 = arith.addf %56, %80 : vector<16x32xf32>
    %82 = vector.extract_strided_slice %5 {offsets = [0, 24], sizes = [16, 8], strides = [1, 1]} : vector<16x96xf32> to vector<16x8xf32>
    %83 = vector.shape_cast %82 : vector<16x8xf32> to vector<2x8x8xf32>
    %84 = vector.extract_strided_slice %5 {offsets = [0, 56], sizes = [16, 8], strides = [1, 1]} : vector<16x96xf32> to vector<16x8xf32>
    %85 = vector.shape_cast %84 : vector<16x8xf32> to vector<2x8x8xf32>
    %86 = vector.extract_strided_slice %5 {offsets = [0, 88], sizes = [16, 8], strides = [1, 1]} : vector<16x96xf32> to vector<16x8xf32>
    %87 = vector.shape_cast %86 : vector<16x8xf32> to vector<2x8x8xf32>
    "tpu.trace_start"() <{level = 10 : i32, message = "bsd,btd->bst"}> : () -> ()
    %cst_31 = arith.constant dense<0.000000e+00> : vector<2x8x8xf32>
    %88 = tpu.matmul %83, %85, %cst_31 {dimension_numbers = #tpu.dot_dimension_numbers<[2], [2], [1], [1], [0, 0, 0, 1, 1, 1], [0], [0]>} : vector<2x8x8xf32>, vector<2x8x8xf32>, vector<2x8x8xf32> -> vector<2x8x8xf32>
    "tpu.trace_stop"() : () -> ()
    %cst_32 = arith.constant 0.353553385 : f32
    %89 = vector.broadcast %cst_32 : f32 to vector<2x8x8xf32>
    %90 = arith.mulf %88, %89 : vector<2x8x8xf32>
    %cst_33 = arith.constant dense<0xFF800000> : vector<2x8xf32>
    %91 = vector.multi_reduction <maximumf>, %90, %cst_33 [2] : vector<2x8x8xf32> to vector<2x8xf32>
    %92 = vector.shape_cast %91 : vector<2x8xf32> to vector<2x8x1xf32>
    %93 = vector.broadcast %92 : vector<2x8x1xf32> to vector<2x8x8xf32>
    %94 = arith.subf %90, %93 : vector<2x8x8xf32>
    %95 = math.exp %94 : vector<2x8x8xf32>
    %cst_34 = arith.constant dense<0.000000e+00> : vector<2x8xf32>
    %96 = vector.multi_reduction <add>, %95, %cst_34 [2] : vector<2x8x8xf32> to vector<2x8xf32>
    %97 = vector.shape_cast %96 : vector<2x8xf32> to vector<2x8x1xf32>
    %98 = tpu.reciprocal %97 {approx = true} : vector<2x8x1xf32> -> vector<2x8x1xf32>
    %99 = vector.broadcast %98 : vector<2x8x1xf32> to vector<2x8x8xf32>
    %100 = arith.mulf %95, %99 : vector<2x8x8xf32>
    "tpu.trace_start"() <{level = 10 : i32, message = "bst,btd->bsd"}> : () -> ()
    %cst_35 = arith.constant dense<0.000000e+00> : vector<2x8x8xf32>
    %101 = tpu.matmul %100, %87, %cst_35 {dimension_numbers = #tpu.dot_dimension_numbers<[2], [1], [1], [2], [0, 0, 0, 1, 1, 2], [0], [0]>} : vector<2x8x8xf32>, vector<2x8x8xf32>, vector<2x8x8xf32> -> vector<2x8x8xf32>
    "tpu.trace_stop"() : () -> ()
    %102 = vector.shape_cast %101 : vector<2x8x8xf32> to vector<16x8xf32>
    %c3 = arith.constant 3 : index
    %c0_36 = arith.constant 0 : index
    %c0_37 = arith.constant 0 : index
    %103 = vector.load %arg3[%c3, %c0_36, %c0_37] : memref<4x8x32xf32, #tpu.memory_space<vmem>>, vector<1x8x32xf32>
    %104 = vector.shape_cast %103 : vector<1x8x32xf32> to vector<8x32xf32>
    %cst_38 = arith.constant dense<0.000000e+00> : vector<16x32xf32>
    %105 = tpu.matmul %102, %104, %cst_38 {dimension_numbers = #tpu.dot_dimension_numbers<[1], [0], [0], [1], [0, 0, 1, 1], [], []>} : vector<16x8xf32>, vector<8x32xf32>, vector<16x32xf32> -> vector<16x32xf32>
    %106 = arith.addf %81, %105 : vector<16x32xf32>
    %c0_39 = arith.constant 0 : index
    %c0_40 = arith.constant 0 : index
    %107 = vector.load %arg4[%c0_39, %c0_40] : memref<1x32xf32, #tpu.memory_space<vmem>>, vector<1x32xf32>
    %108 = vector.broadcast %107 : vector<1x32xf32> to vector<16x32xf32>
    %109 = arith.addf %106, %108 : vector<16x32xf32>
    %110 = arith.addf %109, %0 : vector<16x32xf32>
    %111 = vector.shape_cast %110 : vector<16x32xf32> to vector<2x8x32xf32>
    %cst_41 = arith.constant dense<0.000000e+00> : vector<2x32xf32>
    %112 = vector.multi_reduction <add>, %111, %cst_41 [1] : vector<2x8x32xf32> to vector<2x32xf32>
    %cst_42 = arith.constant 8.000000e+00 : f32
    %113 = vector.broadcast %cst_42 : f32 to vector<2x32xf32>
    %114 = arith.divf %112, %113 : vector<2x32xf32>
    %c0_43 = arith.constant 0 : index
    %c0_44 = arith.constant 0 : index
    %115 = vector.load %arg5[%c0_43, %c0_44] : memref<32x32xf32, #tpu.memory_space<vmem>>, vector<32x32xf32>
    %cst_45 = arith.constant dense<0.000000e+00> : vector<2x32xf32>
    %116 = tpu.matmul %114, %115, %cst_45 {dimension_numbers = #tpu.dot_dimension_numbers<[1], [0], [0], [1], [0, 0, 1, 1], [], []>} : vector<2x32xf32>, vector<32x32xf32>, vector<2x32xf32> -> vector<2x32xf32>
    %c0_46 = arith.constant 0 : index
    %c0_47 = arith.constant 0 : index
    %117 = vector.load %arg6[%c0_46, %c0_47] : memref<1x32xf32, #tpu.memory_space<vmem>>, vector<1x32xf32>
    %118 = vector.broadcast %117 : vector<1x32xf32> to vector<2x32xf32>
    %119 = arith.addf %116, %118 : vector<2x32xf32>
    %cst_48 = arith.constant 0.000000e+00 : f32
    %120 = vector.broadcast %cst_48 : f32 to vector<2x32xf32>
    %121 = arith.maximumf %119, %120 : vector<2x32xf32>
    %c0_49 = arith.constant 0 : index
    %c0_50 = arith.constant 0 : index
    %122 = vector.load %arg7[%c0_49, %c0_50] : memref<32x128xf32, #tpu.memory_space<vmem>>, vector<32x128xf32>
    %cst_51 = arith.constant dense<0.000000e+00> : vector<2x128xf32>
    %123 = tpu.matmul %121, %122, %cst_51 {dimension_numbers = #tpu.dot_dimension_numbers<[1], [0], [0], [1], [0, 0, 1, 1], [], []>} : vector<2x32xf32>, vector<32x128xf32>, vector<2x128xf32> -> vector<2x128xf32>
    %c0_52 = arith.constant 0 : index
    %c0_53 = arith.constant 0 : index
    %124 = vector.load %arg8[%c0_52, %c0_53] : memref<1x128xf32, #tpu.memory_space<vmem>>, vector<1x128xf32>
    %125 = vector.broadcast %124 : vector<1x128xf32> to vector<2x128xf32>
    %126 = arith.addf %123, %125 : vector<2x128xf32>
    %c0_54 = arith.constant 0 : index
    %c0_55 = arith.constant 0 : index
    %127 = vector.load %arg9[%c0_54, %c0_55] : memref<2x128xf32, #tpu.memory_space<vmem>>, vector<2x128xf32>
    tpu.vector_store %arg9[%c0_54, %c0_55], %126 {strides = array<i32>} : memref<2x128xf32, #tpu.memory_space<vmem>>, vector<2x128xf32>,
    return
  }
}

</mosaic_0001>

<bundles_post_ra>
// kernel: tpu_custom_call.1
= control target key start
LH: loop header
LB: loop body
LE: loop exit
PB: predicated region body
PF: predicated region fallthrough
CT: control target
= control target key end

     0   :  { %14 = vsyncpa [#allocation3], 0  ;;  %s2868_s0 = inlined_call_operand.hbm [shape: f32[16,32], index: 0, kind: input, shape index: {}]   ;;  %s2869_s1 = inlined_call_operand.hbm [shape: f32[32,96], index: 1, kind: input, shape index: {}]   ;;  %s2870_s2 = inlined_call_operand.vmem [shape: f32[1,96], index: 2, kind: input, shape index: {}]   ;;  %s2871_s3 = inlined_call_operand.hbm [shape: f32[4,8,32], index: 3, kind: input, shape index: {}]   ;;  %s2872_s4 = inlined_call_operand.vmem [shape: f32[1,32], index: 4, kind: input, shape index: {}]   ;;  %s2873_s5 = inlined_call_operand.hbm [shape: f32[32,32], index: 5, kind: input, shape index: {}]   ;;  %s2874_s6 = inlined_call_operand.vmem [shape: f32[1,32], index: 6, kind: input, shape index: {}]   ;;  %s2875_s7 = inlined_call_operand.hbm [shape: f32[32,128], index: 7, kind: input, shape index: {}]   ;;  %s2876_s8 = inlined_call_operand.vmem [shape: f32[1,128], index: 8, kind: input, shape index: {}]   ;;  %s2877_s9 = inlined_call_operand.hbm [shape: f32[2,128], index: 9, kind: output, shape index: {}]  }
   0x1   :  { %15 = vsyncpa [#allocation6], 0 }
   0x2   :  { %16 = vsyncpa [#allocation9], 0 }
   0x3   :  { %17 = vsyncpa [#allocation4], 0  ;;  %s2529_s30 = smov [#allocation5]   ;;  %s2530_s11 = smov [#allocation8]  }
   0x4   :  { %s35_s10 = sshll.u32 %s2529_s30, 4  ;;  %s63_s12 = sshll.u32 %s2530_s11, 4  ;;  %s36_s10 = int_to_ptr.vmem [resolvable:$true] %s35_s10  ;;  %s2601_s12 = int_to_ptr.vmem [resolvable:$true] %s63_s12 }
   0x5   :  { %s2389_s15 = scalar_lea.hbm %s2869_s1, 512 }
   0x6   :  { %p2390_p0 = scmp.ne.s32.totalorder %s2869_s1, %s2389_s15  ;;  %p2393_p1 = scmp.lt.u32.totalorder %s2389_s15, %s2869_s1 }
   0x8   :  { %p2395_p2 = pnand %p2393_p1, %p2390_p0 }
   0xa   :  { %2398 = shalt.err (!%p2395_p2)
}
   0xb   :  { %s2399_s20 = scalar_lea.vmem %s36_s10, 512  ;;  %p2404_p4 = scmp.lt.s32.totalorder %s36_s10, %s36_s10 }
   0xc   :  { %p2400_p3 = scmp.ne.s32.totalorder %s36_s10, %s2399_s20  ;;  %p2405_p5 = scmp.lt.s32.totalorder %s2399_s20, %s2399_s20 }
   0xe   :  { %p2406_p6 = por %p2405_p5, %p2404_p4 }
  0x10   :  { %p2407_p7 = pnand %p2406_p6, %p2400_p3 }
  0x12   :  { %2410 = shalt.err (!%p2407_p7)
}
  0x13   :  { %s2531_s21 = smov 128   ;;  %s2532_s22 = smov 8  }
  0x14   :  { %41 = dma.hbm_to_vmem [thread:$0]  %s2869_s1, 512, %s36_s10, [#allocation6], %s2531_s21, %s2531_s21, %s2532_s22  }
  0x15   :  { %s2411_s27 = scalar_lea.hbm %s2873_s5, 512 }
  0x16   :  { %p2412_p8 = scmp.ne.s32.totalorder %s2873_s5, %s2411_s27  ;;  %p2415_p9 = scmp.lt.u32.totalorder %s2411_s27, %s2873_s5 }
  0x18   :  { %p2417_p10 = pnand %p2415_p9, %p2412_p8 }
  0x1a   :  { %2420 = shalt.err (!%p2417_p10)
}
  0x1b   :  { %s2421_s13 = scalar_lea.vmem %s2601_s12, 512  ;;  %p2426_p12 = scmp.lt.s32.totalorder %s2601_s12, %s2601_s12 }
  0x1c   :  { %p2422_p11 = scmp.ne.s32.totalorder %s2601_s12, %s2421_s13  ;;  %p2427_p13 = scmp.lt.s32.totalorder %s2421_s13, %s2421_s13 }
  0x1e   :  { %p2428_p0 = por %p2427_p13, %p2426_p12 }
  0x20   :  { %p2429_p1 = pnand %p2428_p0, %p2422_p11 }
  0x22   :  { %2432 = shalt.err (!%p2429_p1)
}
  0x23   :  { %69 = dma.hbm_to_vmem [thread:$0]  %s2873_s5, 512, %s2601_s12, [#allocation9], %s2531_s21, %s2531_s21, %s2532_s22  }
  0x24   :  { %s2533_s14 = smov [#allocation2]   ;;  %s2534_s16 = smov [#allocation7]  }
  0x25   :  { %s23_s15 = sshll.u32 %s2533_s14, 4  ;;  %s49_s17 = sshll.u32 %s2534_s16, 4  ;;  %s24_s15 = int_to_ptr.vmem [resolvable:$true] %s23_s15  ;;  %s2638_s17 = int_to_ptr.vmem [resolvable:$true] %s49_s17 }
  0x26   :  { %s2433_s20 = scalar_lea.hbm %s2868_s0, 256 }
  0x27   :  { %p2434_p2 = scmp.ne.s32.totalorder %s2868_s0, %s2433_s20  ;;  %p2437_p3 = scmp.lt.u32.totalorder %s2433_s20, %s2868_s0 }
  0x29   :  { %p2439_p4 = pnand %p2437_p3, %p2434_p2 }
  0x2b   :  { %2442 = shalt.err (!%p2439_p4)
}
  0x2c   :  { %s2443_s5 = scalar_lea.vmem %s24_s15, 256  ;;  %p2448_p6 = scmp.lt.s32.totalorder %s24_s15, %s24_s15 }
  0x2d   :  { %p2444_p5 = scmp.ne.s32.totalorder %s24_s15, %s2443_s5  ;;  %p2449_p7 = scmp.lt.s32.totalorder %s2443_s5, %s2443_s5 }
  0x2f   :  { %p2450_p8 = por %p2449_p7, %p2448_p6 }
  0x31   :  { %p2451_p9 = pnand %p2450_p8, %p2444_p5 }
  0x33   :  { %2454 = shalt.err (!%p2451_p9)
}
  0x34   :  { %29 = dma.hbm_to_vmem [thread:$0]  %s2868_s0, 256, %s24_s15, [#allocation3], %s2531_s21, %s2531_s21, %s2532_s22  }
  0x35   :  { %s2455_s30 = scalar_lea.hbm %s2871_s3, 512 }
  0x36   :  { %p2456_p10 = scmp.ne.s32.totalorder %s2871_s3, %s2455_s30  ;;  %p2459_p11 = scmp.lt.u32.totalorder %s2455_s30, %s2871_s3 }
  0x38   :  { %p2461_p12 = pnand %p2459_p11, %p2456_p10 }
  0x3a   :  { %2464 = shalt.err (!%p2461_p12)
}
  0x3b   :  { %s2465_s14 = scalar_lea.vmem %s2638_s17, 512  ;;  %p2470_p0 = scmp.lt.s32.totalorder %s2638_s17, %s2638_s17 }
  0x3c   :  { %p2466_p13 = scmp.ne.s32.totalorder %s2638_s17, %s2465_s14  ;;  %p2471_p1 = scmp.lt.s32.totalorder %s2465_s14, %s2465_s14 }
  0x3e   :  { %p2472_p2 = por %p2471_p1, %p2470_p0 }
  0x40   :  { %p2473_p3 = pnand %p2472_p2, %p2466_p13 }
  0x42   :  { %2476 = shalt.err (!%p2473_p3)
}
  0x43   :  { %55 = dma.hbm_to_vmem [thread:$0]  %s2871_s3, 512, %s2638_s17, [#allocation6], %s2531_s21, %s2531_s21, %s2532_s22  }
  0x44   :  { %s2535_s16 = smov [#allocation10]   ;;  %s2477_s23 = scalar_lea.hbm %s2875_s7, 512 }
  0x45   :  { %s77_s18 = sshll.u32 %s2535_s16, 4  ;;  %p2478_p4 = scmp.ne.s32.totalorder %s2875_s7, %s2477_s23  ;;  %s78_s18 = int_to_ptr.vmem [resolvable:$true] %s77_s18 }
  0x46   :  { %p2481_p5 = scmp.lt.u32.totalorder %s2477_s23, %s2875_s7 }
  0x48   :  { %p2483_p6 = pnand %p2481_p5, %p2478_p4 }
  0x4a   :  { %2486 = shalt.err (!%p2483_p6)
}
  0x4b   :  { %s2487_s12 = scalar_lea.vmem %s78_s18, 512  ;;  %p2492_p8 = scmp.lt.s32.totalorder %s78_s18, %s78_s18 }
  0x4c   :  { %p2488_p7 = scmp.ne.s32.totalorder %s78_s18, %s2487_s12  ;;  %p2493_p9 = scmp.lt.s32.totalorder %s2487_s12, %s2487_s12 }
  0x4e   :  { %p2494_p10 = por %p2493_p9, %p2492_p8 }
  0x50   :  { %p2495_p11 = pnand %p2494_p10, %p2488_p7 }
  0x52   :  { %2498 = shalt.err (!%p2495_p11)
}
  0x53   :  { %83 = dma.hbm_to_vmem [thread:$0]  %s2875_s7, 512, %s78_s18, [#allocation9], %s2531_s21, %s2531_s21, %s2532_s22  }
  0x54   :  { %2521 = dma.done.wait [#allocation3], 256  }
  0x55   :  { %2522 = vsyncadd [#allocation3], 4294967040 }
  0x56   :  { %2523 = dma.done.wait [#allocation6], 1024  }
  0x57   :  { %2524 = vsyncadd [#allocation6], 4294966272 }
  0x58   :  { %2525 = dma.done.wait [#allocation9], 1024  }
  0x59   :  { %2526 = vsyncadd [#allocation9], 4294966272  ;;  %vm114_vm0 = vcmask 261120   ;;  %v103_v0 = vld [vmem:[#allocation5] sm:$0xff]  ;;  %v104_v1 = vld [vmem:[#allocation5 + $0x8] sm:$0xff]  ;;  %v2536_v8 = vmov 0.0  }
  0x5a   :  { %v105_v2 = vld [vmem:[#allocation5 + $0x10] sm:$0xff]  ;;  %v2309_v3 = vpack.c.bf16 %v104_v1, %v103_v0  ;;  %v106_v4 = vld [vmem:[#allocation5 + $0x18] sm:$0xff]  ;;  %2187 = vmatprep.subr.mxu1 %v2536_v8  ;;  %vm2537_vm1 = vmmov 0   ;;  %s2538_s22 = smov 96   ;;  %vm199_vm2 = vcmask 64512   ;;  %s2540_s27 = smov 88  }
  0x5b   :  { %v2690_v5 = vld [vmem:[#allocation2] sm:$0xff]  ;;  %v2313_v6 = vpack.c.bf16 %v106_v4, %v105_v2  ;;  %v2694_v7 = vld [vmem:[#allocation2 + $0x8] sm:$0xff]  ;;  %2189 = vmatprep.mubr.msk.f32.mxu1 %vm2537_vm1, %v2536_v8  ;;  %s2541_s28 = smov 120   ;;  %s2542_s29 = smov 56   ;;  %vm1899_vm3 = vcmask 1041409  }
  0x5c   :  { %2184 = vmatprep.mubr.msk.f32.mxu0 %vm114_vm0, %v2690_v5  ;;  %2310 = vmatprep.subr.bf16.mxu0 %v2309_v3  ;;  %v2076_v9 = vld [vmem:[%s2870_s2] ss:$0 sm:$0xff]  ;;  %s2539_s2 = smov 64   ;;  %s2543_s30 = smov 112  }
  0x5d   :  { %2312 = vmatpush3.bf16.msra.mxu0 %v2309_v3  ;;  %s2544_s11 = smov 80   ;;  %s2545_s13 = smov 48  }
  0x5e   :  { %2314 = vmatprep.subr.bf16.mxu0 %v2313_v6  ;;  %s2546_s1 = smov 72   ;;  %s2547_s10 = smov 104  }
  0x5f   :  { %s2548_s14 = smov 40   ;;  %s2550_s20 = smov [#allocation11]  }
  0x60   :  { %s2065_s23 = sshll.u32 %s2550_s20, 4  ;;  %s2066_s23 = int_to_ptr.vmem [resolvable:$true] %s2065_s23 }
  0x61   :  { %2316 = vmatpush3.bf16.msra.mxu0 %v2313_v6  ;;  %s2499_s24 = scalar_lea.vmem %s2066_s23, 32  ;;  %p2504_p13 = scmp.lt.s32.totalorder %s2066_s23, %s2066_s23 }
  0x62   :  { %2207 = vmatprep.subr.mxu0 %v2536_v8  ;;  %p2500_p12 = scmp.ne.s32.totalorder %s2066_s23, %s2499_s24  ;;  %p2505_p0 = scmp.lt.s32.totalorder %s2499_s24, %s2499_s24 }
  0x64   :  { %2185 = vmatmul.mubr.msk.f32.vlgmr.msra.gmra.mrb[0].mxu0 %vm114_vm0, %v2694_v7  ;;  %p2506_p1 = por %p2505_p0, %p2504_p13 }
  0x65   :  { %2209 = vmatprep.mubr.msk.f32.mxu0 %vm2537_vm1, %v2536_v8 }
  0x66   :  { %p2507_p2 = pnand %p2506_p1, %p2500_p12 }
 0x137   :  { %v2186_v10 = vpop.f32.mrb[0].mxu0 }
 0x138   :  { %v187_v11 = vpop.f32.mrb[1].mxu0  ;;  %v2710_v13 = vadd.f32 %v2186_v10, %v2076_v9 }
 0x139   :  { %v2707_v12 = vadd.f32 %v2076_v9, %v187_v11 }
 0x13b   :  { %197 = vrot.lane.b32.xlu0 %v2707_v12, %s2538_s22 }
 0x13f   :  { %275 = vrot.lane.b32.xlu0 %v2710_v13, %s2538_s22 }
 0x1ad   :  { %v198_v14 = vpop.permute.xlu0 %197 }
 0x1ae   :  { %2188 = vmatpush3.xpose.msk.msra.mxu1 %vm199_vm2, %v198_v14 }
 0x1af   :  { %2192 = vmatprep.subr.mxu1 %v2536_v8 }
 0x1b1   :  { %2190 = vmatmul.mubr.msk.f32.vlgmr.msra.gmra.mrb[0].mxu1 %vm199_vm2, %v2707_v12  ;;  %v276_v15 = vpop.permute.xlu0 %275 }
 0x1b2   :  { %2193 = vmatpush3.xpose.msk.msra.mxu1 %vm199_vm2, %v276_v15  ;;  %2194 = vmatprep.mubr.msk.f32.mxu1 %vm2537_vm1, %v2536_v8 }
 0x1b3   :  { %2197 = vmatprep.subr.mxu1 %v2536_v8 }
 0x1b5   :  { %2195 = vmatmul.mubr.msk.f32.vlgmr.msra.gmra.mrb[2].mxu1 %vm199_vm2, %v2710_v13 }
 0x1b6   :  { %2199 = vmatprep.mubr.msk.f32.mxu1 %vm2537_vm1, %v2536_v8 }
 0x284   :  { %v270_v16 = vpop.f32.mrb[0].mxu1 }
 0x285   :  { %v351_v17 = vmul.f32 0.35355338, %v270_v16  ;;  %v2191_v18 = vpop.f32.mrb[1].mxu1 }
 0x287   :  { %v353_v19 = vsel %vm199_vm2, %v351_v17, -inf }
 0x288   :  { %354 = vmax.xlane.f32.xlu1 %v353_v19  ;;  %v347_v20 = vpop.f32.mrb[2].mxu1 }
 0x289   :  { %v352_v21 = vmul.f32 0.35355338, %v347_v20  ;;  %v2196_v22 = vpop.f32.mrb[3].mxu1 }
 0x28a   :  { %v861_v22 = vld [vmem:[#allocation7 + $0x8] sm:$0xff] }
 0x28b   :  { %v356_v23 = vsel %vm199_vm2, %v352_v21, -inf }
 0x28c   :  { %357 = vmax.xlane.f32.xlu1 %v356_v23  ;;  %v527_v23 = vld [vmem:[#allocation7] sm:$0xff] }
 0x29d   :  { %375 = vrot.lane.b32.xlu1 %v2707_v12, %s2539_s2 }
 0x2a1   :  { %451 = vrot.lane.b32.xlu1 %v2710_v13, %s2539_s2 }
 0x2a5   :  { %608 = vrot.lane.b32.xlu1 %v2710_v13, %s2540_s27 }
 0x315   :  { %v355_v24 = vpop.xlane.xlu1 %354 }
 0x316   :  { %v359_v25 = vsub.f32 %v351_v17, %v355_v24 }
 0x318   :  { %v361_v26 = vmul.f32 1.442695, %v359_v25 }
 0x319   :  { %v358_v27 = vpop.xlane.xlu1 %357 }
 0x31a   :  { %2357 = vpow2.f32 %v361_v26  ;;  %v360_v28 = vsub.f32 %v352_v21, %v358_v27 }
 0x31c   :  { %v363_v29 = vmul.f32 1.442695, %v360_v28 }
 0x31d   :  { %v376_v30 = vpop.permute.xlu1 %375 }
 0x31e   :  { %2359 = vpow2.f32 %v363_v29  ;;  %2198 = vmatpush3.msra.mxu1 %v376_v30 }
 0x31f   :  { %2202 = vmatprep.subr.mxu1 %v2536_v8 }
 0x321   :  { %v452_v35 = vpop.permute.xlu1 %451 }
 0x324   :  { %v2358_v31 = vpop.eup %2357 }
 0x325   :  { %v365_v32 = vsel %vm199_vm2, %v2358_v31, 0.0  ;;  %v609_v36 = vpop.permute.xlu1 %608 }
 0x326   :  { %366 = vadd.xlane.f32.xlu0 %v365_v32 }
 0x328   :  { %v2360_v33 = vpop.eup %2359 }
 0x329   :  { %v368_v34 = vsel %vm199_vm2, %v2360_v33, 0.0 }
 0x32a   :  { %369 = vadd.xlane.f32.xlu1 %v368_v34 }
 0x33b   :  { %606 = vrot.lane.b32.xlu1 %v2710_v13, %s2541_s28 }
 0x33c   :  { %530 = vrot.lane.b32.xlu0 %v2707_v12, %s2540_s27 }
 0x33f   :  { %528 = vrot.lane.b32.xlu1 %v2707_v12, %s2541_s28 }
 0x3b3   :  { %v367_v37 = vpop.xlane.xlu0 %366 }
 0x3b4   :  { %2361 = vrcp.f32 %v367_v37 }
 0x3b7   :  { %v370_v38 = vpop.xlane.xlu1 %369  ;;  %v531_v39 = vpop.permute.xlu0 %530 }
 0x3b8   :  { %2363 = vrcp.f32 %v370_v38  ;;  %2208 = vmatpush3.xpose.msk.msra.mxu0 %vm199_vm2, %v531_v39 }
 0x3b9   :  { %2217 = vmatprep.subr.mxu0 %v2536_v8 }
 0x3bb   :  { %v607_v40 = vpop.permute.xlu1 %606 }
 0x3be   :  { %v2362_v41 = vpop.eup %2361 }
 0x3bf   :  { %v373_v42 = vmul.f32 %v2362_v41, %v2358_v31  ;;  %v529_v43 = vpop.permute.xlu1 %528 }
 0x3c0   :  { %2210 = vmatmul.mubr.msk.f32.vlgmr.msra.gmra.mrb[2].mxu0 %vm199_vm2, %v529_v43 }
 0x3c1   :  { %2200 = vmatmul.mubr.msk.f32.vlgmr.msra.gmra.mrb[4].mxu1 %vm199_vm2, %v373_v42  ;;  %2219 = vmatprep.mubr.msk.f32.mxu0 %vm2537_vm1, %v2536_v8 }
 0x3c2   :  { %v2364_v44 = vpop.eup %2363  ;;  %2203 = vmatpush3.msra.mxu1 %v452_v35  ;;  %2204 = vmatprep.mubr.msk.f32.mxu1 %vm2537_vm1, %v2536_v8 }
 0x3c3   :  { %v374_v45 = vmul.f32 %v2364_v44, %v2360_v33  ;;  %2212 = vmatprep.subr.mxu1 %v2536_v8 }
 0x3c5   :  { %2205 = vmatmul.mubr.msk.f32.vlgmr.msra.gmra.mrb[6].mxu1 %vm199_vm2, %v374_v45 }
 0x3c6   :  { %2214 = vmatprep.mubr.msk.f32.mxu1 %vm2537_vm1, %v2536_v8 }
 0x3c9   :  { %2213 = vmatpush3.xpose.msk.msra.mxu1 %vm199_vm2, %v609_v36 }
 0x3ca   :  { %2222 = vmatprep.subr.mxu1 %v2536_v8 }
 0x3cc   :  { %2215 = vmatmul.mubr.msk.f32.vlgmr.msra.gmra.mrb[8].mxu1 %vm199_vm2, %v607_v40 }
 0x3cd   :  { %2224 = vmatprep.mubr.msk.f32.mxu1 %vm2537_vm1, %v2536_v8 }
 0x493   :  { %v602_v46 = vpop.f32.mrb[2].mxu0 }
 0x494   :  { %v2753_v47 = vpop.f32.mrb[4].mxu1  ;;  %v2211_v48 = vpop.f32.mrb[3].mxu0  ;;  %v684_v56 = vmul.f32 0.35355338, %v602_v46 }
 0x495   :  { %v2201_v49 = vpop.f32.mrb[5].mxu1  ;;  %v1357_v48 = vld [vmem:[#allocation7 + $0x10] sm:$0xff] }
 0x496   :  { %v686_v57 = vsel %vm199_vm2, %v684_v56, -inf }
 0x498   :  { %v2755_v50 = vpop.f32.mrb[6].mxu1 }
 0x499   :  { %v2206_v51 = vpop.f32.mrb[7].mxu1 }
 0x49f   :  { %v680_v52 = vpop.f32.mrb[8].mxu1 }
 0x4a0   :  { %v685_v53 = vmul.f32 0.35355338, %v680_v52  ;;  %v2216_v54 = vpop.f32.mrb[9].mxu1 }
 0x4a2   :  { %v689_v55 = vsel %vm199_vm2, %v685_v53, -inf }
 0x4a3   :  { %690 = vmax.xlane.f32.xlu1 %v689_v55 }
 0x4b4   :  { %784 = vrot.lane.b32.xlu1 %v2710_v13, %s2542_s29 }
 0x4b8   :  { %1024 = vrot.lane.b32.xlu1 %v2707_v12, %s2543_s30 }
 0x4bc   :  { %1104 = vrot.lane.b32.xlu1 %v2710_v13, %s2544_s11 }
 0x4c0   :  { %1102 = vrot.lane.b32.xlu1 %v2710_v13, %s2543_s30 }
 0x4e4   :  { %687 = vmax.xlane.f32.xlu1 %v686_v57 }
 0x530   :  { %v691_v58 = vpop.xlane.xlu1 %690 }
 0x531   :  { %v693_v59 = vsub.f32 %v685_v53, %v691_v58 }
 0x533   :  { %v696_v60 = vmul.f32 1.442695, %v693_v59 }
 0x534   :  { %v785_v61 = vpop.permute.xlu1 %784 }
 0x535   :  { %2365 = vpow2.f32 %v696_v60  ;;  %2223 = vmatpush3.msra.mxu1 %v785_v61 }
 0x536   :  { %2237 = vmatprep.subr.mxu1 %v2536_v8 }
 0x538   :  { %v1025_v0 = vpop.permute.xlu1 %1024 }
 0x53c   :  { %v1105_v1 = vpop.permute.xlu1 %1104 }
 0x53f   :  { %v2366_v62 = vpop.eup %2365 }
 0x540   :  { %v701_v63 = vsel %vm199_vm2, %v2366_v62, 0.0  ;;  %v1103_v2 = vpop.permute.xlu1 %1102 }
 0x541   :  { %702 = vadd.xlane.f32.xlu0 %v701_v63 }
 0x557   :  { %1026 = vrot.lane.b32.xlu0 %v2707_v12, %s2544_s11 }
 0x571   :  { %v688_v3 = vpop.xlane.xlu1 %687 }
 0x572   :  { %v692_v4 = vsub.f32 %v684_v56, %v688_v3 }
 0x574   :  { %v694_v6 = vmul.f32 1.442695, %v692_v4 }
 0x576   :  { %2367 = vpow2.f32 %v694_v6 }
 0x580   :  { %v2368_v9 = vpop.eup %2367 }
 0x581   :  { %v698_v10 = vsel %vm199_vm2, %v2368_v9, 0.0 }
 0x582   :  { %699 = vadd.xlane.f32.xlu0 %v698_v10 }
 0x598   :  { %708 = vrot.lane.b32.xlu0 %v2707_v12, %s2542_s29 }
 0x59c   :  { %1280 = vrot.lane.b32.xlu0 %v2710_v13, %s2545_s13 }
 0x5a0   :  { %1443 = vrot.lane.b32.xlu0 %v2707_v12, %s2546_s1 }
 0x5a4   :  { %1521 = vrot.lane.b32.xlu0 %v2710_v13, %s2546_s1 }
 0x5a8   :  { %1441 = vrot.lane.b32.xlu0 %v2707_v12, %s2547_s10 }
 0x5ce   :  { %v703_v11 = vpop.xlane.xlu0 %702 }
 0x5cf   :  { %2369 = vrcp.f32 %v703_v11 }
 0x5d2   :  { %v1027_v16 = vpop.permute.xlu0 %1026 }
 0x5d9   :  { %v2370_v14 = vpop.eup %2369 }
 0x5da   :  { %v707_v15 = vmul.f32 %v2370_v14, %v2366_v62 }
 0x5dc   :  { %2225 = vmatmul.mubr.msk.f32.vlgmr.msra.gmra.mrb[10].mxu1 %vm199_vm2, %v707_v15 }
 0x5dd   :  { %2238 = vmatpush3.xpose.msk.msra.mxu1 %vm199_vm2, %v1027_v16  ;;  %2239 = vmatprep.mubr.msk.f32.mxu1 %vm2537_vm1, %v2536_v8 }
 0x5de   :  { %2242 = vmatprep.subr.mxu1 %v2536_v8 }
 0x5e0   :  { %2240 = vmatmul.mubr.msk.f32.vlgmr.msra.gmra.mrb[12].mxu1 %vm199_vm2, %v1025_v0 }
 0x5e1   :  { %2243 = vmatpush3.xpose.msk.msra.mxu1 %vm199_vm2, %v1105_v1  ;;  %2244 = vmatprep.mubr.msk.f32.mxu1 %vm2537_vm1, %v2536_v8 }
 0x5e2   :  { %2252 = vmatprep.subr.mxu1 %v2536_v8 }
 0x5e4   :  { %2245 = vmatmul.mubr.msk.f32.vlgmr.msra.gmra.mrb[14].mxu1 %vm199_vm2, %v1103_v2 }
 0x5e5   :  { %2254 = vmatprep.mubr.msk.f32.mxu1 %vm2537_vm1, %v2536_v8 }
 0x60f   :  { %v700_v17 = vpop.xlane.xlu0 %699 }
 0x610   :  { %2371 = vrcp.f32 %v700_v17 }
 0x613   :  { %v709_v18 = vpop.permute.xlu0 %708 }
 0x614   :  { %2218 = vmatpush3.msra.mxu0 %v709_v18 }
 0x615   :  { %2227 = vmatprep.subr.mxu0 %v861_v22 }
 0x617   :  { %v1281_v19 = vpop.permute.xlu0 %1280 }
 0x618   :  { %2253 = vmatpush3.msra.mxu1 %v1281_v19 }
 0x619   :  { %2262 = vmatprep.subr.mxu1 %v2536_v8 }
 0x61a   :  { %v2372_v20 = vpop.eup %2371 }
 0x61b   :  { %v706_v21 = vmul.f32 %v2372_v20, %v2368_v9 }
 0x61d   :  { %2220 = vmatmul.mubr.msk.f32.vlgmr.msra.gmra.mrb[4].mxu0 %vm199_vm2, %v706_v21 }
 0x61e   :  { %2228 = vmatpush3.msra.mxu0 %v861_v22 }
 0x61f   :  { %2232 = vmatprep.subr.mxu0 %v527_v23 }
 0x6af   :  { %v856_v24 = vpop.f32.mrb[10].mxu1 }
 0x6b0   :  { %v2226_v25 = vpop.f32.mrb[11].mxu1 }
 0x6b1   :  { %v1774_v25 = vld [vmem:[#allocation7 + $0x18] sm:$0xff] }
 0x6b3   :  { %v1098_v26 = vpop.f32.mrb[12].mxu1 }
 0x6b4   :  { %v1180_v27 = vmul.f32 0.35355338, %v1098_v26  ;;  %v2241_v28 = vpop.f32.mrb[13].mxu1 }
 0x6b6   :  { %v1182_v29 = vsel %vm199_vm2, %v1180_v27, -inf }
 0x6b7   :  { %1183 = vmax.xlane.f32.xlu1 %v1182_v29  ;;  %v1176_v30 = vpop.f32.mrb[14].mxu1 }
 0x6b8   :  { %v1181_v31 = vmul.f32 0.35355338, %v1176_v30  ;;  %v2246_v32 = vpop.f32.mrb[15].mxu1 }
 0x6ba   :  { %v1185_v33 = vsel %vm199_vm2, %v1181_v31, -inf }
 0x6bb   :  { %1186 = vmax.xlane.f32.xlu1 %v1185_v33  ;;  %v1887_v33 = vld [vmem:[#allocation8 + $0x8] sm:$0xff] }
 0x6f0   :  { %v780_v34 = vpop.f32.mrb[4].mxu0 }
 0x6f1   :  { %v2221_v35 = vpop.f32.mrb[5].mxu0  ;;  %2229 = vmatprep.mubr.msk.f32.mxu0 %vm199_vm2, %v780_v34 }
 0x6f2   :  { %2230 = vmatmul.mubr.msk.f32.vlgmr.msra.gmra.mrb[6].mxu0 %vm199_vm2, %v856_v24  ;;  %v2549_v35 = vmov 0.0|0.0  }
 0x6f3   :  { %2234 = vmatprep.mubr.msk.f32.mxu0 %vm199_vm2, %v2753_v47  ;;  %2233 = vmatpush3.msra.mxu0 %v527_v23 }
 0x6f4   :  { %2247 = vmatprep.subr.mxu0 %v2536_v8 }
 0x6fa   :  { %2235 = vmatmul.mubr.msk.f32.vlgmr.msra.gmra.mrb[6].mxu0 %vm199_vm2, %v2755_v50  ;;  %v1444_v50 = vpop.permute.xlu0 %1443 }
 0x6fb   :  { %2249 = vmatprep.mubr.msk.f32.mxu0 %vm2537_vm1, %v2536_v8 }
 0x6fe   :  { %v1522_v54 = vpop.permute.xlu0 %1521 }
 0x702   :  { %v1442_v56 = vpop.permute.xlu0 %1441 }
 0x744   :  { %v1184_v36 = vpop.xlane.xlu1 %1183 }
 0x745   :  { %v1188_v37 = vsub.f32 %v1180_v27, %v1184_v36  ;;  %v1888_v36 = vld [vmem:[#allocation8 + $0x10] sm:$0xff] }
 0x747   :  { %v1190_v38 = vmul.f32 1.442695, %v1188_v37  ;;  %v1889_v37 = vld [vmem:[#allocation8 + $0x18] sm:$0xff] }
 0x748   :  { %v1187_v39 = vpop.xlane.xlu1 %1186 }
 0x749   :  { %2373 = vpow2.f32 %v1190_v38  ;;  %v1189_v40 = vsub.f32 %v1181_v31, %v1187_v39  ;;  %v2321_v38 = vpack.c.bf16 %v1889_v37, %v1888_v36  ;;  %v1974_v39 = vld [vmem:[#allocation10] sm:$0xff] }
 0x74b   :  { %v1192_v41 = vmul.f32 1.442695, %v1189_v40  ;;  %v1975_v40 = vld [vmem:[#allocation10 + $0x8] sm:$0xff] }
 0x74d   :  { %2375 = vpow2.f32 %v1192_v41  ;;  %v2324_v41 = vpack.c.bf16 %v1975_v40, %v1974_v39 }
 0x753   :  { %v2374_v42 = vpop.eup %2373 }
 0x754   :  { %v1194_v43 = vsel %vm199_vm2, %v2374_v42, 0.0 }
 0x755   :  { %1195 = vadd.xlane.f32.xlu1 %v1194_v43 }
 0x757   :  { %v2376_v44 = vpop.eup %2375 }
 0x758   :  { %v1197_v45 = vsel %vm199_vm2, %v2376_v44, 0.0 }
 0x759   :  { %1198 = vadd.xlane.f32.xlu1 %v1197_v45 }
 0x76a   :  { %1204 = vrot.lane.b32.xlu1 %v2707_v12, %s2545_s13 }
 0x76e   :  { %1519 = vrot.lane.b32.xlu1 %v2710_v13, %s2547_s10 }
 0x7e2   :  { %v1196_v46 = vpop.xlane.xlu1 %1195 }
 0x7e3   :  { %2377 = vrcp.f32 %v1196_v46 }
 0x7e6   :  { %v1199_v47 = vpop.xlane.xlu1 %1198 }
 0x7e7   :  { %2379 = vrcp.f32 %v1199_v47 }
 0x7ea   :  { %v1205_v49 = vpop.permute.xlu1 %1204 }
 0x7eb   :  { %2248 = vmatpush3.msra.mxu0 %v1205_v49 }
 0x7ec   :  { %2257 = vmatprep.subr.mxu0 %v1357_v48 }
 0x7ed   :  { %v2378_v51 = vpop.eup %2377 }
 0x7ee   :  { %v1202_v52 = vmul.f32 %v2378_v51, %v2374_v42  ;;  %v1520_v61 = vpop.permute.xlu1 %1519 }
 0x7f0   :  { %2250 = vmatmul.mubr.msk.f32.vlgmr.msra.gmra.mrb[8].mxu0 %vm199_vm2, %v1202_v52 }
 0x7f1   :  { %v2380_v53 = vpop.eup %2379  ;;  %2258 = vmatpush3.msra.mxu0 %v1357_v48 }
 0x7f2   :  { %v1203_v55 = vmul.f32 %v2380_v53, %v2376_v44  ;;  %2267 = vmatprep.subr.mxu0 %v2536_v8 }
 0x7f4   :  { %2255 = vmatmul.mubr.msk.f32.vlgmr.msra.gmra.mrb[16].mxu1 %vm199_vm2, %v1203_v55 }
 0x7f5   :  { %2263 = vmatpush3.xpose.msk.msra.mxu1 %vm199_vm2, %v1444_v50  ;;  %2264 = vmatprep.mubr.msk.f32.mxu1 %vm2537_vm1, %v2536_v8 }
 0x7f6   :  { %2272 = vmatprep.subr.mxu1 %v2536_v8 }
 0x7f8   :  { %2265 = vmatmul.mubr.msk.f32.vlgmr.msra.gmra.mrb[18].mxu1 %vm199_vm2, %v1442_v56 }
 0x7f9   :  { %2274 = vmatprep.mubr.msk.f32.mxu1 %vm2537_vm1, %v2536_v8 }
 0x8c3   :  { %v1276_v57 = vpop.f32.mrb[8].mxu0 }
 0x8c4   :  { %v2251_v58 = vpop.f32.mrb[9].mxu0  ;;  %2259 = vmatprep.mubr.msk.f32.mxu0 %vm199_vm2, %v1276_v57 }
 0x8c7   :  { %v1352_v59 = vpop.f32.mrb[16].mxu1 }
 0x8c8   :  { %v2256_v60 = vpop.f32.mrb[17].mxu1  ;;  %2260 = vmatmul.mubr.msk.f32.vlgmr.msra.gmra.mrb[6].mxu0 %vm199_vm2, %v1352_v59 }
 0x8c9   :  { %2268 = vmatpush3.xpose.msk.msra.mxu0 %vm199_vm2, %v1522_v54  ;;  %2269 = vmatprep.mubr.msk.f32.mxu0 %vm2537_vm1, %v2536_v8 }
 0x8ca   :  { %2277 = vmatprep.subr.mxu0 %v2536_v8 }
 0x8cb   :  { %v1515_v62 = vpop.f32.mrb[18].mxu1 }
 0x8cc   :  { %v1597_v63 = vmul.f32 0.35355338, %v1515_v62  ;;  %v2266_v0 = vpop.f32.mrb[19].mxu1  ;;  %2270 = vmatmul.mubr.msk.f32.vlgmr.msra.gmra.mrb[10].mxu0 %vm199_vm2, %v1520_v61 }
 0x8cd   :  { %2279 = vmatprep.mubr.msk.f32.mxu0 %vm2537_vm1, %v2536_v8  ;;  %v1977_v0 = vld [vmem:[#allocation10 + $0x18] sm:$0xff] }
 0x8ce   :  { %v1599_v1 = vsel %vm199_vm2, %v1597_v63, -inf }
 0x8cf   :  { %1600 = vmax.xlane.f32.xlu0 %v1599_v1 }
 0x95c   :  { %v1601_v2 = vpop.xlane.xlu0 %1600 }
 0x95d   :  { %v1605_v3 = vsub.f32 %v1597_v63, %v1601_v2  ;;  %v1976_v63 = vld [vmem:[#allocation10 + $0x10] sm:$0xff] }
 0x95e   :  { %v2327_v1 = vpack.c.bf16 %v1977_v0, %v1976_v63  ;;  %v2112_v2 = vld [vmem:[%s2874_s6] ss:$0 sm:$0xff] }
 0x95f   :  { %v1607_v4 = vmul.f32 1.442695, %v1605_v3 }
 0x961   :  { %2381 = vpow2.f32 %v1607_v4 }
 0x96b   :  { %v2382_v6 = vpop.eup %2381 }
 0x96c   :  { %v1611_v9 = vsel %vm199_vm2, %v2382_v6, 0.0 }
 0x96d   :  { %1612 = vadd.xlane.f32.xlu0 %v1611_v9 }
 0x99f   :  { %v1593_v10 = vpop.f32.mrb[10].mxu0 }
 0x9a0   :  { %v1598_v11 = vmul.f32 0.35355338, %v1593_v10  ;;  %v2271_v14 = vpop.f32.mrb[11].mxu0  ;;  %v2114_v10 = vld [vmem:[%s2876_s8] ss:$0 sm:$0xff] }
 0x9a2   :  { %v1602_v15 = vsel %vm199_vm2, %v1598_v11, -inf }
 0x9a3   :  { %1603 = vmax.xlane.f32.xlu1 %v1602_v15 }
 0x9b4   :  { %1621 = vrot.lane.b32.xlu1 %v2707_v12, %s2548_s14 }
 0x9fa   :  { %v1613_v16 = vpop.xlane.xlu0 %1612 }
 0x9fb   :  { %2383 = vrcp.f32 %v1613_v16 }
 0xa05   :  { %v2384_v18 = vpop.eup %2383 }
 0xa06   :  { %v1619_v21 = vmul.f32 %v2384_v18, %v2382_v6 }
 0xa30   :  { %v1604_v17 = vpop.xlane.xlu1 %1603 }
 0xa31   :  { %v1606_v19 = vsub.f32 %v1598_v11, %v1604_v17 }
 0xa33   :  { %v1609_v20 = vmul.f32 1.442695, %v1606_v19 }
 0xa34   :  { %v1622_v22 = vpop.permute.xlu1 %1621 }
 0xa35   :  { %2385 = vpow2.f32 %v1609_v20  ;;  %2273 = vmatpush3.msra.mxu1 %v1622_v22 }
 0xa36   :  { %2275 = vmatmul.mubr.msk.f32.vlgmr.msra.gmra.mrb[20].mxu1 %vm199_vm2, %v1619_v21  ;;  %2317 = vmatprep.subr.bf16.mxu1 %v2549_v35 }
 0xa37   :  { %2295 = vmatprep.mubr.msk.f32.mxu1 %vm2537_vm1, %v2536_v8 }
 0xa3f   :  { %v2386_v23 = vpop.eup %2385 }
 0xa40   :  { %v1614_v24 = vsel %vm199_vm2, %v2386_v23, 0.0 }
 0xa41   :  { %1615 = vadd.xlane.f32.xlu0 %v1614_v24 }
 0xa57   :  { %1697 = vrot.lane.b32.xlu0 %v2710_v13, %s2548_s14  ;;  %v1886_v13 = vld [vmem:[#allocation8] sm:$0xff] }
 0xa58   :  { %v2318_v34 = vpack.c.bf16 %v1887_v33, %v1886_v13 }
 0xa5a   :  { %2319 = vmatpush3.bf16.msra.mxu1 %v2318_v34 }
 0xa5b   :  { %2320 = vmatprep.subr.bf16.mxu1 %v2549_v35 }
 0xa5e   :  { %2322 = vmatpush3.bf16.msra.mxu1 %v2321_v38 }
 0xace   :  { %v1616_v12 = vpop.xlane.xlu0 %1615 }
 0xacf   :  { %2387 = vrcp.f32 %v1616_v12 }
 0xad2   :  { %v1698_v26 = vpop.permute.xlu0 %1697 }
 0xad3   :  { %2278 = vmatpush3.msra.mxu0 %v1698_v26 }
 0xad4   :  { %2282 = vmatprep.subr.mxu0 %v1774_v25 }
 0xad9   :  { %v2388_v27 = vpop.eup %2387 }
 0xada   :  { %v1620_v28 = vmul.f32 %v2388_v27, %v2386_v23 }
 0xadc   :  { %2280 = vmatmul.mubr.msk.f32.vlgmr.msra.gmra.mrb[12].mxu0 %vm199_vm2, %v1620_v28 }
 0xadd   :  { %2283 = vmatpush3.msra.mxu0 %v1774_v25 }
 0xade   :  { %2323 = vmatprep.subr.bf16.mxu0 %v2549_v35 }
 0xb09   :  { %v1693_v29 = vpop.f32.mrb[20].mxu1 }
 0xb0a   :  { %v2276_v30 = vpop.f32.mrb[21].mxu1  ;;  %2284 = vmatprep.mubr.msk.f32.mxu0 %vm199_vm2, %v1693_v29 }
 0xbaf   :  { %v1769_v31 = vpop.f32.mrb[12].mxu0 }
 0xbb0   :  { %v2281_v32 = vpop.f32.mrb[13].mxu0  ;;  %2285 = vmatmul.mubr.msk.f32.vlgmr.msra.gmra.mrb[6].mxu0 %vm199_vm2, %v1769_v31 }
 0xbb1   :  { %2306 = vmatprep.mubr.msk.f32.mxu0 %vm2537_vm1, %v2536_v8  ;;  %2325 = vmatpush3.bf16.msra.mxu0 %v2324_v41  ;;  %v2111_v8 = vld [vmem:[%s2872_s4] ss:$0 sm:$0xff] }
 0xbb2   :  { %2326 = vmatprep.subr.bf16.mxu0 %v2549_v35 }
 0xbb5   :  { %2328 = vmatpush3.bf16.msra.mxu0 %v2327_v1 }
 0xc83   :  { %v2286_v42 = vpop.f32.mrb[6].mxu0 }
 0xc84   :  { %v1866_v43 = vadd.f32 %v2286_v42, %v2111_v8  ;;  %v1847_v44 = vpop.f32.mrb[7].mxu0 }
 0xc85   :  { %v1865_v45 = vadd.f32 %v2111_v8, %v1847_v44 }
 0xc86   :  { %v1868_v46 = vadd.f32 %v1866_v43, %v2694_v7 }
 0xc87   :  { %v1867_v47 = vadd.f32 %v1865_v45, %v2690_v5 }
 0xc88   :  { %v1876_v48 = vsel %vm114_vm0, %v1868_v46, 0.0 }
 0xc89   :  { %v1877_v49 = vrot.slane %v1876_v48, 4  ;;  %v1869_v50 = vsel %vm114_vm0, %v1867_v47, 0.0 }
 0xc8a   :  { %v1870_v51 = vrot.slane %v1869_v50, 4 }
 0xc8b   :  { %v1878_v52 = vadd.f32 %v1877_v49, %v1876_v48 }
 0xc8c   :  { %v1871_v53 = vadd.f32 %v1870_v51, %v1869_v50 }
 0xc8d   :  { %v1879_v54 = vrot.slane %v1878_v52, 2 }
 0xc8e   :  { %v1872_v55 = vrot.slane %v1871_v53, 2 }
 0xc8f   :  { %v1880_v56 = vadd.f32 %v1879_v54, %v1878_v52 }
 0xc90   :  { %v1873_v57 = vadd.f32 %v1872_v55, %v1871_v53 }
 0xc91   :  { %v1881_v58 = vrot.slane %v1880_v56, 1 }
 0xc92   :  { %v1874_v59 = vrot.slane %v1873_v57, 1 }
 0xc93   :  { %v1882_v60 = vadd.f32 %v1881_v58, %v1880_v56 }
 0xc94   :  { %v1875_v61 = vadd.f32 %v1874_v59, %v1873_v57 }
 0xc95   :  { %v1885_v62 = vmul.f32 0.125, %v1882_v60 }
 0xc96   :  { %v1884_v7 = vmul.f32 0.125, %v1875_v61 }
 0xc98   :  { %v1900_v5 = vsel %vm1899_vm3, %v1885_v62, %v1884_v7 }
 0xc99   :  { %2296 = vmatmul.mubr.msk.f32.vlgmr.msra.gmra.mrb[22].mxu1 %vm114_vm0, %v1900_v5 }
 0xd6c   :  { %v1969_v3 = vpop.f32.mrb[22].mxu1 }
 0xd6d   :  { %v1970_v4 = vadd.f32 %v2112_v2, %v1969_v3  ;;  %v2297_v6 = vpop.f32.mrb[23].mxu1 }
 0xd6f   :  { %v1973_v9 = vmax.f32 %v1970_v4, 0.0 }
 0xd71   :  { %2307 = vmatmul.mubr.msk.f32.vlgmr.msra.gmra.mrb[14].mxu0 %vm114_vm0, %v1973_v9 }
 0xe44   :  { %v2054_v11 = vpop.f32.mrb[14].mxu0 }
 0xe45   :  { %v2055_v14 = vadd.f32 %v2114_v10, %v2054_v11  ;;  %v2308_v15 = vpop.f32.mrb[15].mxu0 }
 0xe47   :  { %2058 = vst [vmem:[#allocation11] sm:$0x3] %v2055_v14 }
 0xe48   :  { %2510 = shalt.err (!%p2507_p2)
}
 0xe49   :  { %s2511_s26 = scalar_lea.hbm %s2877_s9, 32 }
 0xe4a   :  { %p2512_p3 = scmp.ne.s32.totalorder %s2877_s9, %s2511_s26  ;;  %p2515_p4 = scmp.lt.u32.totalorder %s2511_s26, %s2877_s9 }
 0xe4c   :  { %p2517_p5 = pnand %p2515_p4, %p2512_p3 }
 0xe4e   :  { %2520 = shalt.err (!%p2517_p5)
}
 0xe4f   :  { %2068 = dma.vmem_to_hbm [thread:$0]  %s2066_s23, 32, %s2877_s9, [#allocation4]  }
 0xe50   :  { %2527 = dma.done.wait [#allocation4], 32  }
 0xe51   :  { %2528 = vsyncadd [#allocation4], 4294967264 }
 0xe52   :  { %2072 = vsyncpa [#allocation3], 1 }
 0xe53   :  { %2073 = vsyncpa [#allocation6], 1 }
 0xe54   :  { %2074 = vsyncpa [#allocation9], 1 }
 0xe55   :  { %2075 = vsyncpa [#allocation4], 1 }

</bundles_post_ra>
